<compile_context>
chip_gen: v5e
topology: v5e:2x2
jax: 0.10.0
libtpu: 0.0.40
codegen_flags: <defaults>
</compile_context>

<pallas_src>
import math

import jax
import jax.numpy as jnp
from jax.experimental import pallas as pl
from jax.experimental.pallas import tpu as pltpu


def _interp_matrix(in_size: int, out_size: int, align_corners: bool,
                   scale=None) -> jnp.ndarray:
    """1-D linear interpolation matrix (out_size, in_size), PyTorch semantics."""
    out_idx = jnp.arange(out_size, dtype=jnp.float32)
    if align_corners:
        if out_size > 1:
            src = out_idx * (float(in_size - 1) / float(out_size - 1))
        else:
            src = jnp.zeros((out_size,), jnp.float32)
    else:
        # PyTorch uses 1/scale_factor when a scale_factor is supplied,
        # else in/out; these agree for integer scale factors.
        s = (1.0 / float(scale)) if scale is not None else float(in_size) / float(out_size)
        src = (out_idx + 0.5) * s - 0.5
        src = jnp.maximum(src, 0.0)  # area_pixel_compute_source_index clamp
    idx0 = jnp.clip(jnp.floor(src).astype(jnp.int32), 0, in_size - 1)
    idx1 = jnp.minimum(idx0 + 1, in_size - 1)
    lam1 = src - idx0.astype(jnp.float32)
    lam0 = 1.0 - lam1
    rows = jnp.arange(out_size)
    mat = jnp.zeros((out_size, in_size), jnp.float32)
    mat = mat.at[rows, idx0].add(lam0)
    mat = mat.at[rows, idx1].add(lam1)
    return mat


def _interp_kernel(awt_ref, aht_ref, x_ref, o_ref):
    # awt_ref: (W, W_out)   column-interp matrix, transposed, in x dtype
    # aht_ref: (H, H_out)   row-interp matrix, transposed, in x dtype
    # x_ref  : (B, H, W)    a batch of (n, c) image slices
    # o_ref  : (B, H_out, W_out)
    B, H, W = x_ref.shape
    _, H_out, W_out = o_ref.shape

    x = x_ref[...]                                   # (B, H, W), native dtype

    # Width pass: one flattened matmul with M = B*H (amortizes MXU fill/drain).
    t = jnp.dot(x.reshape(B * H, W), awt_ref[...],
                preferred_element_type=jnp.float32)  # (B*H, W_out) f32
    t = t.reshape(B, H, W_out).astype(x.dtype)

    # Height pass: transpose (XLU) then one flattened matmul with M = B*W_out.
    tt = jnp.swapaxes(t, 1, 2).reshape(B * W_out, H)     # (B*W_out, H)
    o = jnp.dot(tt, aht_ref[...],
                preferred_element_type=jnp.float32)      # (B*W_out, H_out) f32
    o = jnp.swapaxes(o.reshape(B, W_out, H_out), 1, 2)   # (B, H_out, W_out)

    # TODO(synk): for W_out < 128 these stores are lane-masked; a fully
    # lane-dense (B, H_out*W_out) output would need a minor-dim-merging
    # reshape in-kernel, which we avoid for lowering safety.
    o_ref[...] = o.astype(o_ref.dtype)


class Interpolate:
    """Pallas equivalent of spa Interpolate(scale_factor, mode, align_corners)."""

    def __init__(self, scale_factor, mode, align_corners=False):
        if mode != "bilinear":
            # TODO(synk): only bilinear (4-D NCHW) is implemented; nearest /
            # bicubic / 1-D linear / trilinear are not supported here.
            raise NotImplementedError(f"mode={mode!r} not supported")
        self.scale_factor = scale_factor
        self.mode = mode
        self.align_corners = align_corners

    def __call__(self, x: jnp.ndarray) -> jnp.ndarray:
        N, C, H, W = x.shape
        if isinstance(self.scale_factor, (tuple, list)):
            sh, sw = self.scale_factor
        else:
            sh = sw = self.scale_factor
        H_out = int(math.floor(H * sh))
        W_out = int(math.floor(W * sw))

        # Interp matrices (PyTorch semantics), cast to input dtype so the MXU
        # runs in the native dtype with f32 accumulation.
        a_h_t = _interp_matrix(H, H_out, self.align_corners, sh).T.astype(x.dtype)  # (H, H_out)
        a_w_t = _interp_matrix(W, W_out, self.align_corners, sw).T.astype(x.dtype)  # (W, W_out)

        NC = N * C
        x_flat = x.reshape(NC, H, W)

        itemsize = jnp.dtype(x.dtype).itemsize
        per_img_bytes = (H * W + H_out * W_out) * itemsize
        target_block_bytes = 2 * 1024 * 1024          # ~2 MiB in+out per grid step
        B = int(max(1, min(NC, target_block_bytes // per_img_bytes)))
        # Prefer >= 2 grid blocks so both v7x TensorCores get work (no-op on v5e/v6e).
        if NC > 1 and pl.cdiv(NC, B) < 2:
            B = pl.cdiv(NC, 2)
        num_blocks = pl.cdiv(NC, B)
        NC_pad = num_blocks * B
        if NC_pad != NC:
            x_flat = jnp.pad(x_flat, ((0, NC_pad - NC), (0, 0), (0, 0)))

        in_block_bytes = B * H * W * itemsize
        out_block_bytes = B * H_out * W_out * itemsize
        mat_bytes = (H * H_out + W * W_out) * itemsize
        # Double-buffered in/out blocks + f32 intermediates + headroom;
        # stay well under v7x's 64 MiB physical VMEM.
        vmem_limit = (2 * (in_block_bytes + out_block_bytes)
                      + 4 * B * H_out * W_out * 4 + mat_bytes + (8 << 20))
        vmem_limit = int(min(max(vmem_limit, 16 << 20), 48 << 20))

        flops = 2 * NC_pad * (H * W * W_out + H * H_out * W_out)
        bytes_accessed = NC_pad * (H * W + H_out * W_out) * itemsize + mat_bytes

        out = pl.pallas_call(
            _interp_kernel,
            out_shape=jax.ShapeDtypeStruct((NC_pad, H_out, W_out), x.dtype),
            grid_spec=pltpu.PrefetchScalarGridSpec(
                num_scalar_prefetch=0,
                grid=(num_blocks,),
                in_specs=[
                    pl.BlockSpec((W, W_out), lambda i: (0, 0)),   # resident
                    pl.BlockSpec((H, H_out), lambda i: (0, 0)),   # resident
                    pl.BlockSpec((B, H, W), lambda i: (i, 0, 0)),
                ],
                out_specs=pl.BlockSpec((B, H_out, W_out), lambda i: (i, 0, 0)),
            ),
            compiler_params=pltpu.CompilerParams(
                dimension_semantics=("parallel",),
                vmem_limit_bytes=vmem_limit,
            ),
            cost_estimate=pl.CostEstimate(
                flops=int(flops),
                transcendentals=0,
                bytes_accessed=int(bytes_accessed),
            ),
        )(a_w_t, a_h_t, x_flat)

        return out[:NC].reshape(N, C, H_out, W_out)


if __name__ == "__main__":
    key = jax.random.PRNGKey(0)
    N, C, H, W = 2, 4, 16, 16
    x = jax.random.normal(key, (N, C, H, W), dtype=jnp.float32)

    module = Interpolate(scale_factor=2, mode="bilinear", align_corners=False)
    y = jax.block_until_ready(module(x))

    H_out, W_out = H * 2, W * 2
    assert y.shape == (N, C, H_out, W_out), y.shape

    # Reference 1: same separable math via plain-JAX einsum.
    a_h = _interp_matrix(H, H_out, False, 2)
    a_w = _interp_matrix(W, W_out, False, 2)
    y_ref = jnp.einsum("oh,nchw,pw->ncop", a_h, x, a_w)
    err = float(jnp.max(jnp.abs(y - y_ref)))
    assert err < 1e-5, err

    # Reference 2: independent semantic check (half-pixel bilinear upsampling
    # matches PyTorch align_corners=False for integer scale factors).
    y_jax = jax.image.resize(x, (N, C, H_out, W_out), method="bilinear")
    err2 = float(jnp.max(jnp.abs(y - y_jax)))
    assert err2 < 1e-4, err2

    print("KERNEL_OK")
</pallas_src>

<mosaic_0001>
module attributes {stable_mosaic.version = 11 : i64} {
  func.func @_interp_kernel(%arg0: i32, %arg1: memref<16x32xf32, #tpu.memory_space<vmem>>, %arg2: memref<16x32xf32, #tpu.memory_space<vmem>>, %arg3: memref<4x16x16xf32, #tpu.memory_space<vmem>>, %arg4: memref<4x32x32xf32, #tpu.memory_space<vmem>>) attributes {dimension_semantics = [#tpu.dimension_semantics<parallel>], iteration_bounds = array<i64: 2>, scalar_prefetch = 0 : i64, scratch_operands = 0 : i64, tpu.core_type = #tpu.core_type<tc>, window_params = [{pipeline_mode = #tpu.pipeline_mode<synchronous>, transform_indices = @transform_0, window_bounds = array<i64: 16, 32>}, {pipeline_mode = #tpu.pipeline_mode<synchronous>, transform_indices = @transform_1, window_bounds = array<i64: 16, 32>}, {transform_indices = @transform_2, window_bounds = array<i64: 4, 16, 16>}, {transform_indices = @transform_3, window_bounds = array<i64: 4, 32, 32>}]} {
    %c0 = arith.constant 0 : index
    %c0_0 = arith.constant 0 : index
    %c0_1 = arith.constant 0 : index
    %0 = vector.load %arg3[%c0, %c0_0, %c0_1] : memref<4x16x16xf32, #tpu.memory_space<vmem>>, vector<4x16x16xf32>
    %1 = vector.shape_cast %0 : vector<4x16x16xf32> to vector<64x16xf32>
    %c0_2 = arith.constant 0 : index
    %c0_3 = arith.constant 0 : index
    %2 = vector.load %arg1[%c0_2, %c0_3] : memref<16x32xf32, #tpu.memory_space<vmem>>, vector<16x32xf32>
    %cst = arith.constant dense<0.000000e+00> : vector<64x32xf32>
    %3 = tpu.matmul %1, %2, %cst {dimension_numbers = #tpu.dot_dimension_numbers<[1], [0], [0], [1], [0, 0, 1, 1], [], []>} : vector<64x16xf32>, vector<16x32xf32>, vector<64x32xf32> -> vector<64x32xf32>
    %4 = vector.shape_cast %3 : vector<64x32xf32> to vector<4x16x32xf32>
    %5 = tpu.transpose %4, [0, 2, 1] : vector<4x16x32xf32> -> vector<4x32x16xf32>
    %6 = vector.shape_cast %5 : vector<4x32x16xf32> to vector<128x16xf32>
    %c0_4 = arith.constant 0 : index
    %c0_5 = arith.constant 0 : index
    %7 = vector.load %arg2[%c0_4, %c0_5] : memref<16x32xf32, #tpu.memory_space<vmem>>, vector<16x32xf32>
    %cst_6 = arith.constant dense<0.000000e+00> : vector<128x32xf32>
    %8 = tpu.matmul %6, %7, %cst_6 {dimension_numbers = #tpu.dot_dimension_numbers<[1], [0], [0], [1], [0, 0, 1, 1], [], []>} : vector<128x16xf32>, vector<16x32xf32>, vector<128x32xf32> -> vector<128x32xf32>
    %9 = vector.shape_cast %8 : vector<128x32xf32> to vector<4x32x32xf32>
    %10 = tpu.transpose %9, [0, 2, 1] : vector<4x32x32xf32> -> vector<4x32x32xf32>
    %c0_7 = arith.constant 0 : index
    %c0_8 = arith.constant 0 : index
    %c0_9 = arith.constant 0 : index
    %11 = vector.load %arg4[%c0_7, %c0_8, %c0_9] : memref<4x32x32xf32, #tpu.memory_space<vmem>>, vector<4x32x32xf32>
    tpu.vector_store %arg4[%c0_7, %c0_8, %c0_9], %10 {strides = array<i32>} : memref<4x32x32xf32, #tpu.memory_space<vmem>>, vector<4x32x32xf32>,
    return
  }
  func.func @transform_0(%arg0: i32) -> (i32, i32) {
    %c0_i32 = arith.constant 0 : i32
    %c0_i32_0 = arith.constant 0 : i32
    %c0_i32_1 = arith.constant 0 : i32
    return %c0_i32, %c0_i32_0 : i32, i32
  }
  func.func @transform_1(%arg0: i32) -> (i32, i32) {
    %c0_i32 = arith.constant 0 : i32
    %c0_i32_0 = arith.constant 0 : i32
    %c0_i32_1 = arith.constant 0 : i32
    return %c0_i32, %c0_i32_0 : i32, i32
  }
  func.func @transform_2(%arg0: i32) -> (i32, i32, i32) {
    %c0_i32 = arith.constant 0 : i32
    %c0_i32_0 = arith.constant 0 : i32
    %c0_i32_1 = arith.constant 0 : i32
    return %arg0, %c0_i32, %c0_i32_0 : i32, i32, i32
  }
  func.func @transform_3(%arg0: i32) -> (i32, i32, i32) {
    %c0_i32 = arith.constant 0 : i32
    %c0_i32_0 = arith.constant 0 : i32
    %c0_i32_1 = arith.constant 0 : i32
    return %arg0, %c0_i32, %c0_i32_0 : i32, i32, i32
  }
}

</mosaic_0001>

<bundles_post_ra>
// kernel: tpu_custom_call.1
= control target key start
LH: loop header
LB: loop body
LE: loop exit
PB: predicated region body
PF: predicated region fallthrough
CT: control target
= control target key end

     0   :  { %8 = vsyncpa [#allocation3], 0  ;;  %s1331_s0 = inlined_call_operand.hbm [shape: f32[16,32], index: 0, kind: input, shape index: {}]   ;;  %s1332_s1 = inlined_call_operand.hbm [shape: f32[16,32], index: 1, kind: input, shape index: {}]   ;;  %s1333_s2 = inlined_call_operand.hbm [shape: f32[8,16,16], index: 2, kind: input, shape index: {}]   ;;  %s1334_s3 = inlined_call_operand.hbm [shape: f32[8,32,32], index: 3, kind: output, shape index: {}]  }
   0x1   :  { %9 = vsyncpa [#allocation6], 0 }
   0x2   :  { %10 = vsyncpa [#allocation4], 0 }
   0x3   :  { %12 = vsyncpa [#allocation4 + $0x1], 0  ;;  %s1116_s12 = smov 0   ;;  %s1118_s13 = smov 0  }
   0x4   :  { %s1120_s14 = smov 0   ;;  %s1122_s15 = smov 0  }
   0x5 LB: > { %s1137_s16 = sadd.s32 4294967295, %s1088_s15   ;;  %s798_s17 = sadd.s32 4294967294, %s1088_s15   ;;  %s1088_s15 = sphi %s1122_s15, %s1344_s15   ;;  %s1084_s14 = sphi %s1120_s14, %s1343_s14   ;;  %s1080_s13 = sphi %s1118_s13, %s1342_s13   ;;  %s1076_s12 = sphi %s1116_s12, %s1341_s12  }
   0x6   : > { %p80_p0 = scmp.ne.s32.totalorder %s1080_s13, %s1076_s12  ;;  %p81_p1 = scmp.eq.s32.totalorder %s1137_s16, 0 }
   0x7   : > { %p104_p2 = scmp.eq.s32.totalorder %s1137_s16, 1  ;;  %p110_p3 = scmp.eq.s32.totalorder %s798_s17, 1 }
   0x8   : > { %p1146_p4 = por %p81_p1, %p80_p0  ;;  %p799_p5 = scmp.ge.s32.totalorder %s1088_s15, 1 }
   0x9   : > { %p1151_p6 = por %p110_p3, %p80_p0  ;;  %p117_p7 = scmp.lt.s32.totalorder %s1088_s15, 3 }
   0xa   : > { %s128_s22 = sshll.u32 %s1331_s0, 4  ;;  %s1090_s24 = smov [#allocation2]   ;;  %s129_s22 = int_to_ptr.hbm [resolvable:$true] %s128_s22 }
   0xb   : > { %p1159_p8 = pnand %p799_p5, %p117_p7  ;;  %s130_s25 = sshll.u32 %s1090_s24, 4  ;;  %s131_s25 = int_to_ptr.vmem [resolvable:$true] %s130_s25 }
   0xc   : > { %s142_s28 = sshll.u32 %s1332_s1, 4  ;;  %s1091_s29 = smov 128   ;;  %s143_s28 = int_to_ptr.hbm [resolvable:$true] %s142_s28 }
   0xd   : > { %p864_p9 = pneg %p1159_p8  ;;  %s1092_s30 = smov 8  }
   0xe   : > { %s1093_s4 = smov [#allocation5]   ;;  %s1178_s6 = sadd.s32 1, %s1088_s15  }
   0xf   : > { %p865_p10 = pnand %p864_p9, %p81_p1  ;;  %s144_s5 = sshll.u32 %s1093_s4, 4  ;;  %s145_s5 = int_to_ptr.vmem [resolvable:$true] %s144_s5 }
  0x10   : > { %s67_s7 = sadd.s32 1, %s1084_s14  ;;  %s64_s8 = ssub.s32 %s1088_s15, %s1178_s6 }
  0x11   : > { %867 = dma.hbm_to_vmem [thread:$0]  (!%p865_p10), %s129_s22, 256, %s131_s25, [#allocation3], %s1091_s29, %s1091_s29, %s1092_s30  }
  0x12   : > { %870 = dma.hbm_to_vmem [thread:$0]  (!%p865_p10), %s143_s28, 256, %s145_s5, [#allocation6], %s1091_s29, %s1091_s29, %s1092_s30  }
  0x13   : > { %p74_p12 = scmp.ne.s32.totalorder %s1084_s14, %s1080_s13  ;;  %p65_p13 = scmp.eq.s32.totalorder %s64_s8, 0 }
  0x14   : > { %p75_p0 = scmp.eq.s32.totalorder %s1088_s15, 0  ;;  %p881_p7 = scmp.lt.s32.totalorder %s1088_s15, 2 }
  0x15   : > { %p1188_p3 = por %p104_p2, %p74_p12  ;;  %s158_s11 = sand.u32 1, %s1088_s15  }
  0x16   : > { %s1193_s10 = scalar_select %p65_p13, %s1084_s14, %s67_s7  }
  0x17   : > { %p76_p5 = por %p75_p0, %p74_p12  ;;  %s160_s17 = sand.u32 1, %s1084_s14  }
  0x18   : > { %s803_s20 = sshll.u32 %s160_s17, 6  ;;  %s843_s21 = sshll.u32 %s1088_s15, 6 }
  0x19   : > { %s168_s25 = scalar_lea.hbm %s1333_s2, %s843_s21  ;;  %s162_s27 = scalar_lea.vmem [#allocation7], %s803_s20 }
  0x1a   : > { %s169_s26 = sshll.u32 %s168_s25, 4  ;;  %s171_s28 = sshll.u32 %s162_s27, 4  ;;  %s170_s26 = int_to_ptr.hbm [resolvable:$true] %s169_s26  ;;  %s172_s28 = int_to_ptr.vmem [resolvable:$true] %s171_s28 }
  0x1b   : > { %p1202_p2 = pnand %p881_p7, %p76_p5  ;;  %s159_s5 = scalar_lea.sflag [#allocation3], %s158_s11 }
  0x1c   : > { %s984_s7 = sshra.s32 %s170_s26, 4  ;;  %s991_s20 = scalar_lea.hbm %s1333_s2, 128  ;;  %s985_s7 = int_to_ptr.hbm [resolvable:$true] %s984_s7 }
  0x1d   : > { %s986_s8 = scalar_lea.hbm %s985_s7, 64  ;;  %p988_p10 = pneg %p1202_p2 }
  0x1e   : > { %p987_p9 = scmp.ne.s32.totalorder %s985_s7, %s986_s8  ;;  %p992_p0 = scmp.lt.s32.totalorder %s985_s7, %s1333_s2 }
  0x1f   : > { %p993_p5 = scmp.lt.s32.totalorder %s991_s20, %s986_s8 }
  0x20   : > { %p989_p12 = pnand %p988_p10, %p987_p9 }
  0x21   : > { %p994_p7 = por %p993_p5, %p992_p0 }
  0x22   : > { %p990_p13 = pneg %p989_p12 }
  0x24   : > { %p995_p11 = pnand %p994_p7, %p990_p13 }
  0x26   : > { %998 = shalt.err (!%p995_p11)
}
  0x27   : > { %874 = dma.hbm_to_vmem [thread:$0]  (!%p1202_p2), %s170_s26, 1024, %s172_s28, %s159_s5, %s1091_s29, %s1091_s29, %s1092_s30  }
  0x28   : > { %183 = sbr.rel (%p1159_p8) target bundleno = 721 (0x2d1), region = 32 }
  0x2d   : > { %1059 = dma.done.wait (%p81_p1), [#allocation3], 256  }
  0x2e   : > { %1061 = vsyncadd (%p81_p1), [#allocation3], 4294967040 }
  0x2f   : > { %1063 = dma.done.wait (%p81_p1), [#allocation6], 256  }
  0x30   : > { %1065 = vsyncadd (%p81_p1), [#allocation6], 4294967040  ;;  %s195_s11 = sand.u32 1, %s1137_s16   ;;  %s1231_s29 = sand.u32 1, %s1080_s13  }
  0x31   : > { %s810_s23 = sshll.u32 %s1231_s29, 6  ;;  %s196_s30 = scalar_lea.sflag [#allocation3], %s195_s11 }
  0x32   : > { %s199_s25 = scalar_lea.vmem [#allocation7], %s810_s23 }
  0x33   : > { %1067 = dma.done.wait (%p1146_p4), %s196_s30, 1024  }
  0x34   : > { %1069 = vsyncadd (%p1146_p4), %s196_s30, 4294966272  ;;  %v234_v0 = vld [vmem:[#allocation2 + $0x8] sm:$0xff]  ;;  %v233_v1 = vld [vmem:[#allocation2] sm:$0xff]  ;;  %vm235_vm0 = vcmask 130048   ;;  %s811_s18 = sshll.u32 %s1231_s29, 7  ;;  %vm672_vm1 = vcmask 261120  }
  0x35   : > { %274 = vmatpush.msra.mxu0 %v234_v0  ;;  %v225_v2 = vld [vmem:[%s199_s25] sm:$0xff]  ;;  %846 = vmatpush.msra.mxu3 %v234_v0  ;;  %v231_v3 = vld [vmem:[%s199_s25 + $0x30] sm:$0xff]  ;;  %v226_v4 = vld [vmem:[%s199_s25 + $0x8] sm:$0xff]  ;;  %s1263_s26 = scalar_lea.vmem [#allocation8], %s811_s18  ;;  %s845_s27 = sshll.u32 %s1137_s16, 7 }
  0x36   : > { %v232_v5 = vld [vmem:[%s199_s25 + $0x38] sm:$0xff]  ;;  %v227_v6 = vld [vmem:[%s199_s25 + $0x10] sm:$0xff]  ;;  %v229_v8 = vld [vmem:[%s199_s25 + $0x20] sm:$0xff]  ;;  %s702_s5 = scalar_lea.hbm %s1334_s3, %s845_s27  ;;  %s703_s7 = sshll.u32 %s1263_s26, 4  ;;  %s704_s7 = int_to_ptr.vmem [resolvable:$true] %s703_s7 }
  0x37   : > { %275 = vmatpush.msra.mxu0 %v233_v1  ;;  %847 = vmatpush.msra.mxu3 %v233_v1  ;;  %v228_v7 = vld [vmem:[%s199_s25 + $0x18] sm:$0xff]  ;;  %v230_v9 = vld [vmem:[%s199_s25 + $0x28] sm:$0xff]  ;;  %v429_v15 = vld [vmem:[#allocation5] sm:$0xff]  ;;  %s705_s8 = sshll.u32 %s702_s5, 4  ;;  %s690_s16 = scalar_lea.sflag [#allocation4], %s1231_s29  ;;  %s706_s8 = int_to_ptr.hbm [resolvable:$true] %s705_s8 }
  0x38   : > { %812 = vmatmul.msk.f32.vlgmr.msra.gmra.mxu0 %vm235_vm0, %v225_v2  ;;  %818 = vmatmul.msk.f32.vlgmr.msra.gmra.mxu3 %vm235_vm0, %v231_v3  ;;  %v430_v14 = vld [vmem:[#allocation5 + $0x8] sm:$0xff]  ;;  %s1028_s17 = sshra.s32 %s706_s8, 4  ;;  %s1034_s24 = scalar_lea.hbm %s1334_s3, 256  ;;  %s1029_s17 = int_to_ptr.hbm [resolvable:$true] %s1028_s17 }
  0x39   : > { %493 = vmatpush.msra.mxu1 %v430_v14  ;;  %848 = vmatpush.msra.mxu2 %v430_v14  ;;  %s1030_s21 = scalar_lea.hbm %s1029_s17, 128  ;;  %p1035_p11 = scmp.lt.s32.totalorder %s1029_s17, %s1334_s3 }
  0x3a   : > { %849 = vmatpush.msrb.mxu3 %v430_v14  ;;  %p1031_p1 = scmp.ne.s32.totalorder %s1029_s17, %s1030_s21  ;;  %p1036_p2 = scmp.lt.s32.totalorder %s1034_s24, %s1030_s21 }
  0x3b   : > { %494 = vmatpush.msra.mxu1 %v429_v15  ;;  %850 = vmatpush.msra.mxu2 %v429_v15 }
  0x3c   : > { %851 = vmatpush.msrb.mxu3 %v429_v15  ;;  %p1032_p4 = pnand %p1031_p1, %p1188_p3  ;;  %p1037_p9 = por %p1036_p2, %p1035_p11 }
  0x3e   : > { %p1033_p8 = pneg %p1032_p4 }
  0x40   : > { %813 = vmatmul.msk.f32.gmra.mxu0 %vm235_vm0, %v226_v4  ;;  %819 = vmatmul.msk.f32.gmra.mxu3 %vm235_vm0, %v232_v5  ;;  %p1038_p10 = pnand %p1037_p9, %p1033_p8 }
  0x48   : > { %814 = vmatmul.msk.f32.gmra.mxu0 %vm235_vm0, %v227_v6 }
  0x50   : > { %815 = vmatmul.msk.f32.gmra.mxu0 %vm235_vm0, %v228_v7 }
  0x58   : > { %816 = vmatmul.msk.f32.gmra.mxu0 %vm235_vm0, %v229_v8 }
  0x60   : > { %817 = vmatmul.msk.f32.gmra.mxu0 %vm235_vm0, %v230_v9 }
  0xb5   : > { %v277_v10 = vpop.f32.mrf.mxu0 }
  0xb6   : > { %301 = vxpose.xlu1.b32.start [1/2] (short) (narrow) %v277_v10, 32 }
  0xbb   : > { %v295_v18 = vpop.f32.mrf.mxu3 }
  0xbd   : > { %v280_v11 = vpop.f32.mrf.mxu0 }
  0xbe   : > { %302 = vxpose.xlu1.b32.end [2/2] (short) (narrow) %v280_v11, 32 }
  0xc3   : > { %v298_v19 = vpop.f32.mrf.mxu3 }
  0xc5   : > { %v283_v12 = vpop.f32.mrf.mxu0 }
  0xc6   : > { %333 = vxpose.xlu0.b32.start [1/2] (short) (narrow) %v283_v12, 32 }
  0xcd   : > { %v286_v13 = vpop.f32.mrf.mxu0 }
  0xce   : > { %334 = vxpose.xlu0.b32.end [2/2] (short) (narrow) %v286_v13, 32 }
  0xd5   : > { %v289_v16 = vpop.f32.mrf.mxu0 }
  0xd6   : > { %365 = vxpose.xlu2.b32.start [1/2] (short) (narrow) %v289_v16, 32 }
  0xdd   : > { %v292_v17 = vpop.f32.mrf.mxu0 }
  0xde   : > { %366 = vxpose.xlu2.b32.end [2/2] (short) (narrow) %v292_v17, 32 }
  0xe6   : > { %397 = vxpose.xlu0.b32.start [1/2] (short) (narrow) %v295_v18, 32 }
  0xee   : > { %398 = vxpose.xlu0.b32.end [2/2] (short) (narrow) %v298_v19, 32 }
 0x15a   : > { %v317_v20 = vpop.trf.xlu1 }
 0x15b   : > { %820 = vmatmul.msk.f32.vlgmr.msra.gmra.mxu1 %vm235_vm0, %v317_v20 }
 0x162   : > { %v318_v21 = vpop.trf.xlu1 }
 0x163   : > { %821 = vmatmul.msk.f32.gmra.mxu1 %vm235_vm0, %v318_v21 }
 0x16a   : > { %v319_v22 = vpop.trf.xlu1  ;;  %v349_v23 = vpop.trf.xlu0 }
 0x16b   : > { %822 = vmatmul.msk.f32.gmra.mxu1 %vm235_vm0, %v319_v22 }
 0x16f   : > { %v381_v28 = vpop.trf.xlu2 }
 0x172   : > { %v320_v24 = vpop.trf.xlu1  ;;  %v350_v25 = vpop.trf.xlu0 }
 0x173   : > { %823 = vmatmul.msk.f32.gmra.mxu1 %vm235_vm0, %v320_v24 }
 0x177   : > { %v382_v30 = vpop.trf.xlu2 }
 0x17a   : > { %v351_v26 = vpop.trf.xlu0 }
 0x17b   : > { %824 = vmatmul.msk.f32.gmra.mxu1 %vm235_vm0, %v349_v23  ;;  %826 = vmatmul.msk.f32.vlgmr.msra.gmra.mxu2 %vm235_vm0, %v351_v26 }
 0x17f   : > { %v383_v32 = vpop.trf.xlu2 }
 0x182   : > { %v352_v27 = vpop.trf.xlu0 }
 0x183   : > { %825 = vmatmul.msk.f32.gmra.mxu1 %vm235_vm0, %v350_v25  ;;  %827 = vmatmul.msk.f32.gmra.mxu2 %vm235_vm0, %v352_v27 }
 0x187   : > { %v384_v34 = vpop.trf.xlu2 }
 0x18a   : > { %v413_v29 = vpop.trf.xlu0 }
 0x18b   : > { %828 = vmatmul.msk.f32.gmra.mxu2 %vm235_vm0, %v381_v28  ;;  %832 = vmatmul.msk.f32.vlgmr.msrb.gmra.mxu3 %vm235_vm0, %v413_v29 }
 0x192   : > { %v414_v31 = vpop.trf.xlu0 }
 0x193   : > { %829 = vmatmul.msk.f32.gmra.mxu2 %vm235_vm0, %v382_v30  ;;  %833 = vmatmul.msk.f32.gmra.mxu3 %vm235_vm0, %v414_v31 }
 0x19a   : > { %v415_v33 = vpop.trf.xlu0 }
 0x19b   : > { %830 = vmatmul.msk.f32.gmra.mxu2 %vm235_vm0, %v383_v32  ;;  %834 = vmatmul.msk.f32.gmra.mxu3 %vm235_vm0, %v415_v33 }
 0x1a2   : > { %v416_v35 = vpop.trf.xlu0 }
 0x1a3   : > { %831 = vmatmul.msk.f32.gmra.mxu2 %vm235_vm0, %v384_v34  ;;  %835 = vmatmul.msk.f32.gmra.mxu3 %vm235_vm0, %v416_v35 }
 0x1d8   : > { %v496_v36 = vpop.f32.mrf.mxu1 }
 0x1d9   : > { %544 = vxpose.xlu1.b32.start [1/4] (short) (narrow) %v496_v36, 32 }
 0x1e0   : > { %v499_v37 = vpop.f32.mrf.mxu1 }
 0x1e1   : > { %545 = vxpose.xlu1.b32.cont [2/4] (short) (narrow) %v499_v37, 32 }
 0x1e8   : > { %v502_v38 = vpop.f32.mrf.mxu1 }
 0x1e9   : > { %546 = vxpose.xlu1.b32.cont [3/4] (short) (narrow) %v502_v38, 32 }
 0x1f0   : > { %v505_v39 = vpop.f32.mrf.mxu1 }
 0x1f1   : > { %547 = vxpose.xlu1.b32.end [4/4] (short) (narrow) %v505_v39, 32 }
 0x1f8   : > { %v508_v40 = vpop.f32.mrf.mxu1 }
 0x1f9   : > { %576 = vxpose.xlu2.b32.start [1/4] (short) (narrow) %v508_v40, 32 }
 0x1fe   : > { %v514_v41 = vpop.f32.mrf.mxu2 }
 0x200   : > { %v511_v42 = vpop.f32.mrf.mxu1 }
 0x201   : > { %577 = vxpose.xlu2.b32.cont [2/4] (short) (narrow) %v511_v42, 32 }
 0x206   : > { %v517_v43 = vpop.f32.mrf.mxu2 }
 0x209   : > { %578 = vxpose.xlu2.b32.cont [3/4] (short) (narrow) %v514_v41, 32 }
 0x20e   : > { %v520_v44 = vpop.f32.mrf.mxu2  ;;  %v532_v45 = vpop.f32.mrf.mxu3 }
 0x20f   : > { %640 = vxpose.xlu1.b32.start [1/4] (short) (narrow) %v532_v45, 32  ;;  %608 = vxpose.xlu0.b32.start [1/4] (short) (narrow) %v520_v44, 32 }
 0x211   : > { %579 = vxpose.xlu2.b32.end [4/4] (short) (narrow) %v517_v43, 32 }
 0x216   : > { %v523_v46 = vpop.f32.mrf.mxu2  ;;  %v535_v47 = vpop.f32.mrf.mxu3 }
 0x217   : > { %641 = vxpose.xlu1.b32.cont [2/4] (short) (narrow) %v535_v47, 32  ;;  %609 = vxpose.xlu0.b32.cont [2/4] (short) (narrow) %v523_v46, 32 }
 0x21e   : > { %v526_v48 = vpop.f32.mrf.mxu2  ;;  %v538_v49 = vpop.f32.mrf.mxu3 }
 0x21f   : > { %642 = vxpose.xlu1.b32.cont [3/4] (short) (narrow) %v538_v49, 32  ;;  %610 = vxpose.xlu0.b32.cont [3/4] (short) (narrow) %v526_v48, 32 }
 0x226   : > { %v529_v50 = vpop.f32.mrf.mxu2  ;;  %v541_v51 = vpop.f32.mrf.mxu3 }
 0x227   : > { %643 = vxpose.xlu1.b32.end [4/4] (short) (narrow) %v541_v51, 32  ;;  %611 = vxpose.xlu0.b32.end [4/4] (short) (narrow) %v529_v50, 32 }
 0x27d   : > { %v560_v52 = vpop.trf.xlu1 }
 0x27e   : > { %673 = vst.msk [vmem:[%s1263_s26] sm:$0xff] %vm672_vm1, %v560_v52 }
 0x285   : > { %v561_v53 = vpop.trf.xlu1 }
 0x286   : > { %674 = vst.msk [vmem:[%s1263_s26 + $0x8] sm:$0xff] %vm672_vm1, %v561_v53 }
 0x28d   : > { %v562_v54 = vpop.trf.xlu1 }
 0x28e   : > { %675 = vst.msk [vmem:[%s1263_s26 + $0x10] sm:$0xff] %vm672_vm1, %v562_v54 }
 0x292   : > { %v592_v55 = vpop.trf.xlu2 }
 0x293   : > { %677 = vst.msk [vmem:[%s1263_s26 + $0x20] sm:$0xff] %vm672_vm1, %v592_v55 }
 0x295   : > { %v563_v56 = vpop.trf.xlu1 }
 0x296   : > { %676 = vst.msk [vmem:[%s1263_s26 + $0x18] sm:$0xff] %vm672_vm1, %v563_v56 }
 0x29a   : > { %v593_v57 = vpop.trf.xlu2 }
 0x29b   : > { %678 = vst.msk [vmem:[%s1263_s26 + $0x28] sm:$0xff] %vm672_vm1, %v593_v57 }
 0x2a2   : > { %v594_v58 = vpop.trf.xlu2 }
 0x2a3   : > { %679 = vst.msk [vmem:[%s1263_s26 + $0x30] sm:$0xff] %vm672_vm1, %v594_v58 }
 0x2aa   : > { %v595_v59 = vpop.trf.xlu2 }
 0x2ab   : > { %680 = vst.msk [vmem:[%s1263_s26 + $0x38] sm:$0xff] %vm672_vm1, %v595_v59 }
 0x2b3   : > { %v656_v60 = vpop.trf.xlu1  ;;  %v624_v61 = vpop.trf.xlu0 }
 0x2b4   : > { %685 = vst.msk [vmem:[%s1263_s26 + $0x60] sm:$0xff] %vm672_vm1, %v656_v60 }
 0x2b5   : > { %681 = vst.msk [vmem:[%s1263_s26 + $0x40] sm:$0xff] %vm672_vm1, %v624_v61 }
 0x2bb   : > { %v657_v62 = vpop.trf.xlu1  ;;  %v625_v63 = vpop.trf.xlu0 }
 0x2bc   : > { %686 = vst.msk [vmem:[%s1263_s26 + $0x68] sm:$0xff] %vm672_vm1, %v657_v62 }
 0x2bd   : > { %682 = vst.msk [vmem:[%s1263_s26 + $0x48] sm:$0xff] %vm672_vm1, %v625_v63 }
 0x2c3   : > { %v658_v0 = vpop.trf.xlu1  ;;  %v626_v1 = vpop.trf.xlu0 }
 0x2c4   : > { %687 = vst.msk [vmem:[%s1263_s26 + $0x70] sm:$0xff] %vm672_vm1, %v658_v0 }
 0x2c5   : > { %683 = vst.msk [vmem:[%s1263_s26 + $0x50] sm:$0xff] %vm672_vm1, %v626_v1 }
 0x2cb   : > { %v659_v2 = vpop.trf.xlu1  ;;  %v627_v3 = vpop.trf.xlu0 }
 0x2cc   : > { %688 = vst.msk [vmem:[%s1263_s26 + $0x78] sm:$0xff] %vm672_vm1, %v659_v2 }
 0x2cd   : > { %684 = vst.msk [vmem:[%s1263_s26 + $0x58] sm:$0xff] %vm672_vm1, %v627_v3 }
 0x2ce   : > { %1041 = shalt.err (!%p1038_p10)
}
 0x2cf   : > { %s1094_s29 = smov 128   ;;  %s1095_s30 = smov 8  }
 0x2d0   : > { %862 = dma.vmem_to_hbm [thread:$0]  (%p1188_p3), %s704_s7, 2048, %s706_s8, %s690_s16, %s1094_s29, %s1094_s29, %s1095_s30  }
 0x2d1 PF: > { %s720_s25 = sand.u32 1, %s1076_s12   ;;  %p1340_p12 = scmp.ge.s32.totalorder %s1088_s15, 2 }
 0x2d2   : > { %s721_s18 = scalar_lea.sflag [#allocation4], %s720_s25 }
 0x2d3   : > { %p876_p13 = pnand %p1340_p12, %p1151_p6 }
 0x2d5   : > { %p877_p0 = pneg %p876_p13 }
 0x2d7   : > { %1071 = dma.done.wait (%p877_p0), %s721_s18, 2048  }
 0x2d8   : > { %1073 = vsyncadd (%p877_p0), %s721_s18, 4294965248  ;;  %p15_p5 = scmp.ge.s32.totalorder %s1178_s6, 4   ;;  %s1341_s12 = smov %s1080_s13 }
 0x2d9   : > { %s1342_s13 = smov %s1084_s14  ;;  %s1343_s14 = smov %s1193_s10 }
 0x2da   : > { %s1344_s15 = smov %s1178_s6  ;;  %17 = sbr.rel (!%p15_p5) target bundleno = 5 (0x5), region = 84 }
 0x2df   :  { %727 = vsyncpa [#allocation3], 1 }
 0x2e0   :  { %729 = vsyncpa [#allocation3 + $0x1], 1 }
 0x2e1   :  { %730 = vsyncpa [#allocation6], 1 }
 0x2e2   :  { %731 = vsyncpa [#allocation4], 1 }
 0x2e3   :  { %733 = vsyncpa [#allocation4 + $0x1], 1 }

</bundles_post_ra>
